<compile_context>
chip_gen: v7x
topology: tpu7x:2x2x1
jax: 0.10.0
libtpu: 0.0.40
codegen_flags: <defaults>
</compile_context>

<pallas_src>
import jax
import jax.numpy as jnp
from jax import lax
from jax.experimental import pallas as pl
from jax.experimental.pallas import tpu as pltpu


# --------------------------------------------------------------------------
# Pallas kernels
# --------------------------------------------------------------------------
def _hist_forward_kernel(a_ref, x_ref, wx_ref, wh_ref, b_ref,
                         z_ref, h_sc, c_sc, xwx_sc):
    """One grid step == one timestep of the graph-conv LSTM recurrence.

      gates_t = A_t @ (X @ Wx + H_t @ Wh) + b
      i,f,g,o = split(gates_t); C_{t+1} = f*C_t + i*g; H_{t+1} = o*tanh(C_{t+1})
      Z[t]    = H_{t+1}
    """
    t = pl.program_id(0)
    D = h_sc.shape[-1]

    @pl.when(t == 0)
    def _init():
        h_sc[...] = jnp.zeros_like(h_sc)
        c_sc[...] = jnp.zeros_like(c_sc)
        # X @ Wx is time-invariant: compute once, keep resident across all T.
        xwx_sc[...] = jnp.dot(x_ref[...], wx_ref[...],
                              preferred_element_type=jnp.float32)

    h = h_sc[...]                                                  # [N, D]  f32
    c = c_sc[...]                                                  # [N, D]  f32

    # Two MXU matmuls per step (was four): bf16 inputs, f32 accumulation.
    m = xwx_sc[...] + jnp.dot(h.astype(wh_ref.dtype), wh_ref[...],
                              preferred_element_type=jnp.float32)  # [N, 4D]
    gates = (jnp.dot(a_ref[...], m.astype(a_ref.dtype),
                     preferred_element_type=jnp.float32)
             + b_ref[...])                                         # [N, 4D]

    # TODO(synk): at production sizes make D a multiple of 128 (or put the gate
    # index on sublanes) so these slices are lane-aligned; at D=32 Mosaic
    # inserts a small lane-relayout here (negligible at demo shapes).
    i = jax.nn.sigmoid(gates[:, 0 * D:1 * D])      # sigmoid/tanh -> EUP slot
    f = jax.nn.sigmoid(gates[:, 1 * D:2 * D])
    g = jnp.tanh(gates[:, 2 * D:3 * D])
    o = jax.nn.sigmoid(gates[:, 3 * D:4 * D])

    c_new = f * c + i * g
    h_new = o * jnp.tanh(c_new)
    c_sc[...] = c_new
    h_sc[...] = h_new
    z_ref[...] = h_new.astype(z_ref.dtype)


def _edge_score_kernel(z_ref, idx_ref, out_ref):
    """sigmoid(<Z[src_e], Z[dst_e]>) for a lane-dense block of edges.

    Row gathers are done in-kernel on the MXU with one-hot selection matrices
    built from the VMEM idx block; edges stay on the lane axis throughout, so
    the output store is a full-width [1, B] vst (no masked partial stores).
    """
    n = z_ref.shape[0]
    b = idx_ref.shape[-1]
    z = z_ref[...]                                             # [N, D] f32
    node_iota = lax.broadcasted_iota(jnp.int32, (n, b), 0)     # node id / sublane
    sel_src = (node_iota == idx_ref[0:1, :]).astype(z.dtype)   # [N, B] one-hot
    sel_dst = (node_iota == idx_ref[1:2, :]).astype(z.dtype)   # [N, B] one-hot
    # Contract over the node axis -> [D, B]: exact row gather on the MXU
    # (f32 one-hot * f32 z keeps the gather bit-exact).
    dn = (((0,), (0,)), ((), ()))
    z_src = lax.dot_general(z, sel_src, dn, preferred_element_type=jnp.float32)
    z_dst = lax.dot_general(z, sel_dst, dn, preferred_element_type=jnp.float32)
    scores = jnp.sum(z_src * z_dst, axis=0, keepdims=True)     # [1, B] sublane reduce
    out_ref[...] = jax.nn.sigmoid(scores)


# --------------------------------------------------------------------------
# Wrappers around pallas_call
# --------------------------------------------------------------------------
def gclstm_hist_forward(a_seq, x, wx, wh, b):
    """a_seq: [T, N, N] normalized dense adjacency per snapshot, x: [N, F],
    wx: [F, 4D], wh: [D, 4D], b: [1, 4D]  ->  Z: [T, N, D] float32."""
    T, N, _ = a_seq.shape
    F = x.shape[-1]
    D = wh.shape[0]

    # bf16 MXU inputs (f32 accumulation inside the kernel); the recurrent
    # H/C state and the bias stay f32.
    a_bf = a_seq.astype(jnp.bfloat16)
    x_bf = x.astype(jnp.bfloat16)
    wx_bf = wx.astype(jnp.bfloat16)
    wh_bf = wh.astype(jnp.bfloat16)

    grid_spec = pltpu.PrefetchScalarGridSpec(
        num_scalar_prefetch=0,
        grid=(T,),
        in_specs=[
            pl.BlockSpec((None, N, N), lambda t: (t, 0, 0)),   # A_t (streamed)
            pl.BlockSpec((N, F), lambda t: (0, 0)),            # X   (resident)
            pl.BlockSpec((F, 4 * D), lambda t: (0, 0)),        # Wx  (resident)
            pl.BlockSpec((D, 4 * D), lambda t: (0, 0)),        # Wh  (resident)
            pl.BlockSpec((1, 4 * D), lambda t: (0, 0)),        # b   (resident)
        ],
        out_specs=pl.BlockSpec((None, N, D), lambda t: (t, 0, 0)),  # Z[t]
        scratch_shapes=[
            pltpu.VMEM((N, D), jnp.float32),        # H state
            pltpu.VMEM((N, D), jnp.float32),        # C state
            pltpu.VMEM((N, 4 * D), jnp.float32),    # X @ Wx (resident across T)
        ],
    )
    return pl.pallas_call(
        _hist_forward_kernel,
        out_shape=jax.ShapeDtypeStruct((T, N, D), jnp.float32),
        grid_spec=grid_spec,
        compiler_params=pltpu.CompilerParams(
            dimension_semantics=("arbitrary",),     # sequential recurrence
            vmem_limit_bytes=32 * 1024 * 1024,
        ),
    )(a_bf, x_bf, wx_bf, wh_bf, b)


def edge_scores(z_last, idx):
    """z_last: [N, D] f32, idx: [B, 2] int -> sigmoid(<z_src, z_dst>)  [B]."""
    n, d = z_last.shape
    b = idx.shape[0]
    b_pad = ((b + 127) // 128) * 128                      # lane-dense edge block
    idx_t = jnp.zeros((2, b_pad), jnp.int32).at[:, :b].set(idx.astype(jnp.int32).T)
    out = pl.pallas_call(
        _edge_score_kernel,
        out_shape=jax.ShapeDtypeStruct((1, b_pad), jnp.float32),
        grid=(1,),
        in_specs=[pl.BlockSpec((n, d), lambda i: (0, 0)),
                  pl.BlockSpec((2, b_pad), lambda i: (0, 0))],
        out_specs=pl.BlockSpec((1, b_pad), lambda i: (0, 0)),
    )(z_last, idx_t)
    return out[0, :b]


# --------------------------------------------------------------------------
# AttackModel equivalent
# --------------------------------------------------------------------------
class AttackModelPallas:
    """JAX/Pallas re-implementation of AttackModel (dyngraph == True path)."""

    def __init__(self, num_nodes, in_feats, hidden, historical_len, key):
        self.N, self.F, self.D, self.T = num_nodes, in_feats, hidden, historical_len
        k1, k2, k3 = jax.random.split(key, 3)
        s_x = 1.0 / jnp.sqrt(in_feats)
        s_h = 1.0 / jnp.sqrt(hidden)
        self.wx = jax.random.normal(k1, (in_feats, 4 * hidden), jnp.float32) * s_x
        self.wh = jax.random.normal(k2, (hidden, 4 * hidden), jnp.float32) * s_h
        self.b = jax.random.normal(k3, (1, 4 * hidden), jnp.float32) * 0.01

    def forward(self, graphs, return_all_times=True):
        """graphs: list of (x, adj) snapshots; uses graphs[-1].x like the
        PyTorch wrapper (hist_forward(graphs[-1].x, [edge_index...], ...))."""
        x_last = graphs[-1][0]                                # [N, F]
        a_seq = jnp.stack([adj for (_, adj) in graphs], 0)    # [T, N, N]
        z_all = gclstm_hist_forward(a_seq, x_last, self.wx, self.wh, self.b)
        return z_all if return_all_times else z_all[-1]

    def predict(self, z, idx):
        single_input = idx.ndim != 2
        idx = idx.reshape((1, *idx.shape)) if single_input else idx
        z_last = z[-1] if z.ndim == 3 else z                  # [N, D]
        pred = edge_scores(z_last, idx)                       # [B]
        return pred[0] if single_input else pred


# --------------------------------------------------------------------------
# Helpers (glue, plain JAX)
# --------------------------------------------------------------------------
def make_snapshot(key, num_nodes, in_feats, p_edge=0.25):
    kx, ke = jax.random.split(key)
    x = jax.random.normal(kx, (num_nodes, in_feats), jnp.float32)
    a = jax.random.bernoulli(ke, p_edge, (num_nodes, num_nodes)).astype(jnp.float32)
    a = jnp.maximum(a, a.T)                                   # symmetrize
    a = a + jnp.eye(num_nodes, dtype=jnp.float32)             # self loops
    deg = jnp.sum(a, axis=-1)
    d_inv_sqrt = 1.0 / jnp.sqrt(deg)
    a_norm = a * d_inv_sqrt[:, None] * d_inv_sqrt[None, :]    # D^-1/2 A D^-1/2
    return x, a_norm


if __name__ == "__main__":
    N, F, D, T = 16, 8, 32, 4                                 # small demo shapes
    key = jax.random.PRNGKey(0)
    key, mkey = jax.random.split(key)
    model = AttackModelPallas(N, F, D, historical_len=T, key=mkey)

    snap_keys = jax.random.split(key, T)
    graphs = [make_snapshot(k, N, F) for k in snap_keys]

    z_all = jax.block_until_ready(model.forward(graphs, return_all_times=True))
    assert z_all.shape == (T, N, D)
    assert bool(jnp.all(jnp.isfinite(z_all)))

    idx = jnp.array([[0, 1], [2, 3], [4, 5], [6, 7]], dtype=jnp.int32)
    preds = jax.block_until_ready(model.predict(z_all, idx))  # [4]
    assert preds.shape == (4,)
    assert bool(jnp.all((preds >= 0.0) & (preds <= 1.0)))

    single = jax.block_until_ready(model.predict(z_all, jnp.array([3, 9], jnp.int32)))
    assert single.shape == ()

    print("KERNEL_OK")
</pallas_src>

<mosaic_0001>
module attributes {stable_mosaic.version = 11 : i64} {
  func.func @_hist_forward_kernel(%arg0: i32, %arg1: memref<1x16x16xbf16, #tpu.memory_space<vmem>>, %arg2: memref<16x8xbf16, #tpu.memory_space<vmem>>, %arg3: memref<8x128xbf16, #tpu.memory_space<vmem>>, %arg4: memref<32x128xbf16, #tpu.memory_space<vmem>>, %arg5: memref<1x128xf32, #tpu.memory_space<vmem>>, %arg6: memref<1x16x32xf32, #tpu.memory_space<vmem>>, %arg7: memref<16x32xf32, #tpu.memory_space<vmem>>, %arg8: memref<16x32xf32, #tpu.memory_space<vmem>>, %arg9: memref<16x128xf32, #tpu.memory_space<vmem>>) attributes {dimension_semantics = [#tpu.dimension_semantics<arbitrary>], iteration_bounds = array<i64: 4>, scalar_prefetch = 0 : i64, scratch_operands = 3 : i64, tpu.core_type = #tpu.core_type<tc>, window_params = [{transform_indices = @transform_0, window_bounds = array<i64: 1, 16, 16>}, {pipeline_mode = #tpu.pipeline_mode<synchronous>, transform_indices = @transform_1, window_bounds = array<i64: 16, 8>}, {pipeline_mode = #tpu.pipeline_mode<synchronous>, transform_indices = @transform_2, window_bounds = array<i64: 8, 128>}, {pipeline_mode = #tpu.pipeline_mode<synchronous>, transform_indices = @transform_3, window_bounds = array<i64: 32, 128>}, {pipeline_mode = #tpu.pipeline_mode<synchronous>, transform_indices = @transform_4, window_bounds = array<i64: 1, 128>}, {transform_indices = @transform_5, window_bounds = array<i64: 1, 16, 32>}]} {
    %c0_i32 = arith.constant 0 : i32
    %0 = arith.cmpi eq, %arg0, %c0_i32 : i32
    %1 = arith.extui %0 : i1 to i32
    %c0_i32_0 = arith.constant 0 : i32
    %2 = arith.cmpi ne, %1, %c0_i32_0 : i32
    scf.if %2 {
      %cst_24 = arith.constant 0.000000e+00 : f32
      %47 = vector.broadcast %cst_24 : f32 to vector<16x32xf32>
      %c0_25 = arith.constant 0 : index
      %c0_26 = arith.constant 0 : index
      %48 = vector.load %arg7[%c0_25, %c0_26] : memref<16x32xf32, #tpu.memory_space<vmem>>, vector<16x32xf32>
      tpu.vector_store %arg7[%c0_25, %c0_26], %47 {strides = array<i32>} : memref<16x32xf32, #tpu.memory_space<vmem>>, vector<16x32xf32>,
      %cst_27 = arith.constant 0.000000e+00 : f32
      %49 = vector.broadcast %cst_27 : f32 to vector<16x32xf32>
      %c0_28 = arith.constant 0 : index
      %c0_29 = arith.constant 0 : index
      %50 = vector.load %arg8[%c0_28, %c0_29] : memref<16x32xf32, #tpu.memory_space<vmem>>, vector<16x32xf32>
      tpu.vector_store %arg8[%c0_28, %c0_29], %49 {strides = array<i32>} : memref<16x32xf32, #tpu.memory_space<vmem>>, vector<16x32xf32>,
      %c0_30 = arith.constant 0 : index
      %c0_31 = arith.constant 0 : index
      %51 = vector.load %arg2[%c0_30, %c0_31] : memref<16x8xbf16, #tpu.memory_space<vmem>>, vector<16x8xbf16>
      %c0_32 = arith.constant 0 : index
      %c0_33 = arith.constant 0 : index
      %52 = vector.load %arg3[%c0_32, %c0_33] : memref<8x128xbf16, #tpu.memory_space<vmem>>, vector<8x128xbf16>
      %cst_34 = arith.constant dense<0.000000e+00> : vector<16x128xf32>
      %53 = tpu.matmul %51, %52, %cst_34 {dimension_numbers = #tpu.dot_dimension_numbers<[1], [0], [0], [1], [0, 0, 1, 1], [], []>} : vector<16x8xbf16>, vector<8x128xbf16>, vector<16x128xf32> -> vector<16x128xf32>
      %c0_35 = arith.constant 0 : index
      %c0_36 = arith.constant 0 : index
      %54 = vector.load %arg9[%c0_35, %c0_36] : memref<16x128xf32, #tpu.memory_space<vmem>>, vector<16x128xf32>
      tpu.vector_store %arg9[%c0_35, %c0_36], %53 {strides = array<i32>} : memref<16x128xf32, #tpu.memory_space<vmem>>, vector<16x128xf32>,
    } else {
    }
    %c0 = arith.constant 0 : index
    %c0_1 = arith.constant 0 : index
    %3 = vector.load %arg7[%c0, %c0_1] : memref<16x32xf32, #tpu.memory_space<vmem>>, vector<16x32xf32>
    %c0_2 = arith.constant 0 : index
    %c0_3 = arith.constant 0 : index
    %4 = vector.load %arg8[%c0_2, %c0_3] : memref<16x32xf32, #tpu.memory_space<vmem>>, vector<16x32xf32>
    %c0_4 = arith.constant 0 : index
    %c0_5 = arith.constant 0 : index
    %5 = vector.load %arg9[%c0_4, %c0_5] : memref<16x128xf32, #tpu.memory_space<vmem>>, vector<16x128xf32>
    %6 = arith.truncf %3 : vector<16x32xf32> to vector<16x32xbf16>
    %c0_6 = arith.constant 0 : index
    %c0_7 = arith.constant 0 : index
    %7 = vector.load %arg4[%c0_6, %c0_7] : memref<32x128xbf16, #tpu.memory_space<vmem>>, vector<32x128xbf16>
    %cst = arith.constant dense<0.000000e+00> : vector<16x128xf32>
    %8 = tpu.matmul %6, %7, %cst {dimension_numbers = #tpu.dot_dimension_numbers<[1], [0], [0], [1], [0, 0, 1, 1], [], []>} : vector<16x32xbf16>, vector<32x128xbf16>, vector<16x128xf32> -> vector<16x128xf32>
    %9 = arith.addf %5, %8 : vector<16x128xf32>
    %c0_8 = arith.constant 0 : index
    %c0_9 = arith.constant 0 : index
    %c0_10 = arith.constant 0 : index
    %10 = vector.load %arg1[%c0_8, %c0_9, %c0_10] : memref<1x16x16xbf16, #tpu.memory_space<vmem>>, vector<1x16x16xbf16>
    %11 = vector.shape_cast %10 : vector<1x16x16xbf16> to vector<16x16xbf16>
    %12 = arith.truncf %9 : vector<16x128xf32> to vector<16x128xbf16>
    %cst_11 = arith.constant dense<0.000000e+00> : vector<16x128xf32>
    %13 = tpu.matmul %11, %12, %cst_11 {dimension_numbers = #tpu.dot_dimension_numbers<[1], [0], [0], [1], [0, 0, 1, 1], [], []>} : vector<16x16xbf16>, vector<16x128xbf16>, vector<16x128xf32> -> vector<16x128xf32>
    %c0_12 = arith.constant 0 : index
    %c0_13 = arith.constant 0 : index
    %14 = vector.load %arg5[%c0_12, %c0_13] : memref<1x128xf32, #tpu.memory_space<vmem>>, vector<1x128xf32>
    %15 = vector.broadcast %14 : vector<1x128xf32> to vector<16x128xf32>
    %16 = arith.addf %13, %15 : vector<16x128xf32>
    %17 = vector.extract_strided_slice %16 {offsets = [0, 0], sizes = [16, 32], strides = [1, 1]} : vector<16x128xf32> to vector<16x32xf32>
    %18 = arith.negf %17 : vector<16x32xf32>
    %19 = math.exp %18 : vector<16x32xf32>
    %cst_14 = arith.constant 1.000000e+00 : f32
    %20 = vector.broadcast %cst_14 : f32 to vector<16x32xf32>
    %21 = arith.addf %20, %19 : vector<16x32xf32>
    %22 = arith.divf %20, %21 : vector<16x32xf32>
    %23 = vector.extract_strided_slice %16 {offsets = [0, 32], sizes = [16, 32], strides = [1, 1]} : vector<16x128xf32> to vector<16x32xf32>
    %24 = arith.negf %23 : vector<16x32xf32>
    %25 = math.exp %24 : vector<16x32xf32>
    %cst_15 = arith.constant 1.000000e+00 : f32
    %26 = vector.broadcast %cst_15 : f32 to vector<16x32xf32>
    %27 = arith.addf %26, %25 : vector<16x32xf32>
    %28 = arith.divf %26, %27 : vector<16x32xf32>
    %29 = vector.extract_strided_slice %16 {offsets = [0, 64], sizes = [16, 32], strides = [1, 1]} : vector<16x128xf32> to vector<16x32xf32>
    %30 = math.tanh %29 : vector<16x32xf32>
    %31 = vector.extract_strided_slice %16 {offsets = [0, 96], sizes = [16, 32], strides = [1, 1]} : vector<16x128xf32> to vector<16x32xf32>
    %32 = arith.negf %31 : vector<16x32xf32>
    %33 = math.exp %32 : vector<16x32xf32>
    %cst_16 = arith.constant 1.000000e+00 : f32
    %34 = vector.broadcast %cst_16 : f32 to vector<16x32xf32>
    %35 = arith.addf %34, %33 : vector<16x32xf32>
    %36 = arith.divf %34, %35 : vector<16x32xf32>
    %37 = arith.mulf %28, %4 : vector<16x32xf32>
    %38 = arith.mulf %22, %30 : vector<16x32xf32>
    %39 = arith.addf %37, %38 : vector<16x32xf32>
    %40 = math.tanh %39 : vector<16x32xf32>
    %41 = arith.mulf %36, %40 : vector<16x32xf32>
    %c0_17 = arith.constant 0 : index
    %c0_18 = arith.constant 0 : index
    %42 = vector.load %arg8[%c0_17, %c0_18] : memref<16x32xf32, #tpu.memory_space<vmem>>, vector<16x32xf32>
    tpu.vector_store %arg8[%c0_17, %c0_18], %39 {strides = array<i32>} : memref<16x32xf32, #tpu.memory_space<vmem>>, vector<16x32xf32>,
    %c0_19 = arith.constant 0 : index
    %c0_20 = arith.constant 0 : index
    %43 = vector.load %arg7[%c0_19, %c0_20] : memref<16x32xf32, #tpu.memory_space<vmem>>, vector<16x32xf32>
    tpu.vector_store %arg7[%c0_19, %c0_20], %41 {strides = array<i32>} : memref<16x32xf32, #tpu.memory_space<vmem>>, vector<16x32xf32>,
    %c0_21 = arith.constant 0 : index
    %c0_22 = arith.constant 0 : index
    %c0_23 = arith.constant 0 : index
    %44 = vector.load %arg6[%c0_21, %c0_22, %c0_23] : memref<1x16x32xf32, #tpu.memory_space<vmem>>, vector<1x16x32xf32>
    %45 = vector.shape_cast %44 : vector<1x16x32xf32> to vector<16x32xf32>
    %46 = vector.shape_cast %41 : vector<16x32xf32> to vector<1x16x32xf32>
    tpu.vector_store %arg6[%c0_21, %c0_22, %c0_23], %46 {strides = array<i32>} : memref<1x16x32xf32, #tpu.memory_space<vmem>>, vector<1x16x32xf32>,
    return
  }
  func.func @transform_0(%arg0: i32) -> (i32, i32, i32) {
    %c0_i32 = arith.constant 0 : i32
    %c0_i32_0 = arith.constant 0 : i32
    %c0_i32_1 = arith.constant 0 : i32
    return %arg0, %c0_i32, %c0_i32_0 : i32, i32, i32
  }
  func.func @transform_1(%arg0: i32) -> (i32, i32) {
    %c0_i32 = arith.constant 0 : i32
    %c0_i32_0 = arith.constant 0 : i32
    %c0_i32_1 = arith.constant 0 : i32
    return %c0_i32, %c0_i32_0 : i32, i32
  }
  func.func @transform_2(%arg0: i32) -> (i32, i32) {
    %c0_i32 = arith.constant 0 : i32
    %c0_i32_0 = arith.constant 0 : i32
    %c0_i32_1 = arith.constant 0 : i32
    return %c0_i32, %c0_i32_0 : i32, i32
  }
  func.func @transform_3(%arg0: i32) -> (i32, i32) {
    %c0_i32 = arith.constant 0 : i32
    %c0_i32_0 = arith.constant 0 : i32
    %c0_i32_1 = arith.constant 0 : i32
    return %c0_i32, %c0_i32_0 : i32, i32
  }
  func.func @transform_4(%arg0: i32) -> (i32, i32) {
    %c0_i32 = arith.constant 0 : i32
    %c0_i32_0 = arith.constant 0 : i32
    %c0_i32_1 = arith.constant 0 : i32
    return %c0_i32, %c0_i32_0 : i32, i32
  }
  func.func @transform_5(%arg0: i32) -> (i32, i32, i32) {
    %c0_i32 = arith.constant 0 : i32
    %c0_i32_0 = arith.constant 0 : i32
    %c0_i32_1 = arith.constant 0 : i32
    return %arg0, %c0_i32, %c0_i32_0 : i32, i32, i32
  }
}

</mosaic_0001>

<bundles_post_ra>
// kernel: tpu_custom_call.1
= control target key start
LH: loop header
LB: loop body
LE: loop exit
PB: predicated region body
PF: predicated region fallthrough
CT: control target
= control target key end

     0   :  { %10 = vsyncpa [#allocation6], 0  ;;  %s1081_s0 = inlined_call_operand.hbm [shape: bf16[4,16,16], index: 0, kind: input, shape index: {}]   ;;  %s1082_s1 = inlined_call_operand.vmem [shape: bf16[16,8], index: 1, kind: input, shape index: {}]   ;;  %s1083_s2 = inlined_call_operand.vmem [shape: bf16[8,128], index: 2, kind: input, shape index: {}]   ;;  %s1084_s3 = inlined_call_operand.vmem [shape: bf16[32,128], index: 3, kind: input, shape index: {}]   ;;  %s1085_s4 = inlined_call_operand.vmem [shape: f32[1,128], index: 4, kind: input, shape index: {}]   ;;  %s1086_s5 = inlined_call_operand.hbm [shape: f32[4,16,32], index: 5, kind: output, shape index: {}]  }
   0x1   :  { %12 = vsyncpa [#allocation6 + $0x1], 0 }
   0x2   :  { %13 = vsyncpa [#allocation7], 0 }
   0x3   :  { %15 = vsyncpa [#allocation7 + $0x1], 0  ;;  %s879_s18 = smov 0   ;;  %s881_s19 = smov 0  }
   0x4   :  { %s883_s20 = smov 0   ;;  %s885_s21 = smov 0  }
   0x5 LB: > { %s900_s22 = sadd.s32 4294967295, %s834_s21   ;;  %s607_s23 = sadd.s32 4294967294, %s834_s21   ;;  %s834_s21 = sphi %s885_s21, %s1098_s21   ;;  %s830_s20 = sphi %s883_s20, %s1097_s20   ;;  %s826_s19 = sphi %s881_s19, %s1096_s19   ;;  %s822_s18 = sphi %s879_s18, %s1095_s18  }
   0x6   : > { %s904_s24 = sadd.s32 1, %s834_s21   ;;  %s28_s25 = sadd.s32 1, %s830_s20 }
   0x7   : > { %s25_s26 = ssub.s32 %s834_s21, %s904_s24  ;;  %p35_p0 = scmp.ne.s32.totalorder %s830_s20, %s826_s19 }
   0x8   : > { %p26_p1 = scmp.eq.s32.totalorder %s25_s26, 0  ;;  %p36_p2 = scmp.eq.s32.totalorder %s834_s21, 0 }
   0x9   : > { %p41_p3 = scmp.ne.s32.totalorder %s826_s19, %s822_s18  ;;  %p42_p4 = scmp.eq.s32.totalorder %s900_s22, 0 }
   0xa   : > { %s916_s27 = scalar_select %p26_p1, %s830_s20, %s28_s25  }
   0xb   : > { %p918_p5 = por %p36_p2, %p35_p0  ;;  %p922_p6 = por %p42_p4, %p41_p3 }
   0xc   : > { %p149_p7 = scmp.eq.s32.totalorder %s900_s22, 3  ;;  %p155_p8 = scmp.eq.s32.totalorder %s607_s23, 3 }
   0xd   : > { %p673_p9 = scmp.lt.s32.totalorder %s834_s21, 4  ;;  %s187_s7 = sand.u32 1, %s830_s20  }
   0xe   : > { %p928_p10 = por %p149_p7, %p35_p0  ;;  %p932_p11 = por %p155_p8, %p41_p3 }
   0xf   : > { %s632_s8 = sshll.u32 %s834_s21, 7  ;;  %s610_s9 = sshll.u32 %s187_s7, 3 }
  0x10   : > { %s1090_s30 = scalar_select %p928_p10, 1, 0 }
  0x11   : > { %s1091_s6 = scalar_select %p932_p11, 1, 0 }
  0x12   : > { %s941_s12 = scalar_lea.hbm %s1081_s0, %s632_s8  ;;  %s191_s13 = scalar_lea.vmem [#allocation5], %s610_s9 }
  0x13   : > { %s198_s14 = sshll.u32 %s191_s13, 4  ;;  %p945_p12 = pnand %p673_p9, %p918_p5  ;;  %s949_s14 = int_to_ptr.vmem [resolvable:$true] %s198_s14 }
  0x14   : > { %s951_s16 = scalar_lea.sflag [#allocation6], %s187_s7  ;;  %s738_s17 = scalar_lea.hbm %s941_s12, 128 }
  0x15   : > { %p739_p13 = scmp.ne.s32.totalorder %s941_s12, %s738_s17  ;;  %p740_p0 = pneg %p945_p12 }
  0x16   : > { %s743_s26 = scalar_lea.hbm %s1081_s0, 512  ;;  %p744_p3 = scmp.lt.u32.totalorder %s941_s12, %s1081_s0 }
  0x17   : > { %p741_p1 = pnand %p740_p0, %p739_p13  ;;  %p745_p4 = scmp.lt.u32.totalorder %s743_s26, %s738_s17 }
  0x18   : > { %p747_p7 = scmp.lt.u32.totalorder %s738_s17, %s941_s12 }
  0x19   : > { %p742_p2 = pneg %p741_p1  ;;  %p746_p5 = por %p745_p4, %p744_p3 }
  0x1b   : > { %p748_p8 = por %p747_p7, %p746_p5 }
  0x1d   : > { %p749_p9 = pnand %p748_p8, %p742_p2 }
  0x1f   : > { %752 = shalt.err (!%p749_p9)
}
  0x20   : > { %s753_s7 = scalar_lea.vmem %s949_s14, 128  ;;  %s836_s9 = smov [#allocation5]  }
  0x21   : > { %p754_p13 = scmp.ne.s32.totalorder %s949_s14, %s753_s7  ;;  %s758_s10 = sshll.u32 %s836_s9, 4  ;;  %s759_s10 = int_to_ptr.vmem [resolvable:$false] %s758_s10 }
  0x22   : > { %s760_s11 = scalar_lea.vmem %s759_s10, 256  ;;  %p761_p10 = scmp.lt.s32.totalorder %s949_s14, %s759_s10 }
  0x23   : > { %p756_p1 = pnand %p754_p13, %p740_p0  ;;  %p762_p3 = scmp.lt.s32.totalorder %s760_s11, %s753_s7 }
  0x25   : > { %p757_p11 = pneg %p756_p1  ;;  %p763_p4 = por %p762_p3, %p761_p10 }
  0x27   : > { %p764_p5 = pnand %p763_p4, %p757_p11 }
  0x29   : > { %767 = shalt.err (!%p764_p5)
}
  0x2a   : > { %s837_s13 = smov 64   ;;  %s838_s17 = smov 4  }
  0x2b   : > { %668 = dma.hbm_to_vmem [thread:$0]  (!%p945_p12), %s941_s12, 128, %s949_s14, %s951_s16, %s837_s13, %s837_s13, %s838_s17  }
  0x2c   : > { %p613_p0 = scmp.ge.s32.totalorder %s834_s21, 1  ;;  %p206_p2 = scmp.lt.s32.totalorder %s834_s21, 5 }
  0x2e   : > { %p207_p7 = pnand %p613_p0, %p206_p2 }
  0x2f   : > { %s982_s23 = sand.u32 (!%p207_p7), 1, %s826_s19  }
  0x30   : > { %210 = sbr.rel (%p207_p7) target bundleno = 1229 (0x4cd), region = 40  ;;  %s614_s25 = sshll.u32 (!%p207_p7), %s982_s23, 3 }
  0x31   : > { %s213_s26 = scalar_lea.sflag (!%p207_p7), [#allocation6], %s982_s23  ;;  %s986_s28 = scalar_lea.vmem (!%p207_p7), [#allocation5], %s614_s25 }
  0x37   : > { %813 = dma.done.wait (%p922_p6), %s213_s26, 128  }
  0x38   : > { %815 = vsyncadd (%p922_p6), %s213_s26, 4294967168  ;;  %s615_s12 = sshll.u32 %s982_s23, 4  ;;  %p616_p10 = scmp.ne.s32.totalorder %s900_s22, 0 }
  0x39   : > { %s993_s14 = scalar_lea.vmem [#allocation8], %s615_s12  ;;  %vm248_vm0 = vcmask (!%p616_p10), 261120   ;;  %v255_v0 = vld [vmem:[%s1083_s2] sm:$0xf] (!%p616_p10)  ;;  %vm265_vm1 = vcmask (!%p616_p10), 1043456   ;;  %v839_v1 = vmov (!%p616_p10), 0.0  }
  0x3a   : > { %247 = sbr.rel (%p616_p10) target bundleno = 277 (0x115), region = 48  ;;  %249 = vst.msk [vmem:[#allocation2] sm:$0xff] (!%p616_p10), %vm248_vm0, %v839_v1  ;;  %250 = vst.msk [vmem:[#allocation2 + $0x8] sm:$0xff] (!%p616_p10), %vm248_vm0, %v839_v1  ;;  %641 = vmatprep.subr.bf16.mxu0 (!%p616_p10), %v839_v1  ;;  %v267_v2 = vsel (!%p616_p10), %vm265_vm1, %v255_v0, 0  ;;  %vm840_vm2 = vmmov (!%p616_p10), 0   ;;  %v718_v3 = vld [vmem:[%s1082_s1] sm:$0xff] (!%p616_p10)  }
  0x3b   : > { %251 = vst.msk [vmem:[#allocation3] sm:$0xff] (!%p616_p10), %vm248_vm0, %v839_v1  ;;  %252 = vst.msk [vmem:[#allocation3 + $0x8] sm:$0xff] (!%p616_p10), %vm248_vm0, %v839_v1  ;;  %643 = vmatprep.mubr.msk.bf16.mxu0 (!%p616_p10), %vm840_vm2, %v839_v1  ;;  %642 = vmatpush3.bf16.msra.mxu0 (!%p616_p10), %v267_v2  ;;  %vm261_vm3 = vcmask (!%p616_p10), 64512  }
  0x3e   : > { %644 = vmatmul.mubr.msk.bf16.vlgmr.msra.gmra.mrb[0].mxu0 (!%p616_p10), %vm261_vm3, %v718_v3 }
 0x111   : > { %v303_v4 = vpop.f32.mrb[0].mxu0 }
 0x112   : > { %310 = vst [vmem:[#allocation4] sm:$0xff] %v303_v4  ;;  %v645_v5 = vpop.f32.mrb[1].mxu0 }
 0x113   : > { %v306_v6 = vpop.f32.mrb[2].mxu0 }
 0x114   : > { %311 = vst [vmem:[#allocation4 + $0x8] sm:$0xff] %v306_v6  ;;  %v646_v7 = vpop.f32.mrb[3].mxu0 }
 0x115 PF: > { %v719_v8 = vld [vmem:[%s1084_s3] sm:$0xff]   ;;  %v841_v9 = vmov 0.0   ;;  %v720_v10 = vld [vmem:[%s1084_s3 + $0x8] sm:$0xff]   ;;  %vm842_vm4 = vmmov 0   ;;  %vm335_vm5 = vcmask 261120   ;;  %s843_s13 = smov 32  }
 0x116   : > { %647 = vmatprep.subr.bf16.mxu0 %v841_v9  ;;  %655 = vmatprep.subr.bf16.mxu1 %v841_v9  ;;  %v312_v11 = vld [vmem:[#allocation2] sm:$0xff]  ;;  %v313_v12 = vld [vmem:[#allocation2 + $0x8] sm:$0xff]  ;;  %v314_v14 = vld [vmem:[#allocation3] sm:$0xff]  ;;  %vm397_vm6 = vcmask 130048   ;;  %s844_s26 = smov 64   ;;  %s633_s12 = sshll.u32 %s900_s22, 8 }
 0x117   : > { %648 = vmatpush3.bf16.msra.mxu0 %v719_v8  ;;  %651 = vmatprep.mubr.msk.bf16.mxu0 %vm842_vm4, %v841_v9  ;;  %v318_v13 = vpack.c.bf16 %v313_v12, %v312_v11  ;;  %v315_v15 = vld [vmem:[#allocation3 + $0x8] sm:$0xff]  ;;  %v622_v26 = vld [vmem:[%s1085_s4] ss:$0 sm:$0xff]  ;;  %s534_s15 = sshll.u32 %s993_s14, 4  ;;  %s1031_s8 = scalar_lea.hbm %s1086_s5, %s633_s12  ;;  %s1033_s15 = int_to_ptr.vmem [resolvable:$true] %s534_s15 }
 0x118   : > { %649 = vmatprep.subr.bf16.mxu0 %v841_v9  ;;  %657 = vmatprep.mubr.msk.bf16.mxu1 %vm842_vm4, %v841_v9  ;;  %v721_v25 = vld [vmem:[%s986_s28] sm:$0xff]   ;;  %s845_s28 = smov 96   ;;  %s521_s22 = scalar_lea.sflag [#allocation7], %s982_s23 }
 0x119   : > { %458 = vrot.lane.b32.xlu1 %v314_v14, %s843_s13  ;;  %v316_v16 = vld [vmem:[#allocation4] sm:$0xff]  ;;  %s768_s7 = scalar_lea.vmem %s1033_s15, 256  ;;  %p1093_p11 = scmp.ne.s32.totalorder %s1090_s30, 0 }
 0x11a   : > { %p769_p6 = scmp.ne.s32.totalorder %s1033_s15, %s768_s7  ;;  %s846_s9 = smov [#allocation8]  }
 0x11b   : > { %650 = vmatpush3.bf16.msra.mxu0 %v720_v10  ;;  %v317_v18 = vld [vmem:[#allocation4 + $0x8] sm:$0xff]  ;;  %s772_s10 = sshll.u32 %s846_s9, 4  ;;  %s773_s10 = int_to_ptr.vmem [resolvable:$false] %s772_s10 }
 0x11c   : > { %p770_p12 = pnand %p769_p6, %p1093_p11  ;;  %s774_s11 = scalar_lea.vmem %s773_s10, 512 }
 0x11d   : > { %460 = vrot.lane.b32.xlu1 %v315_v15, %s843_s13  ;;  %p775_p9 = scmp.lt.s32.totalorder %s1033_s15, %s773_s10  ;;  %p776_p13 = scmp.lt.s32.totalorder %s774_s11, %s768_s7 }
 0x11e   : > { %652 = vmatmul.mubr.msk.bf16.vlgmr.msra.gmra.mrb[0].mxu0 %vm335_vm5, %v318_v13  ;;  %p771_p8 = pneg %p770_p12 }
 0x11f   : > { %p777_p1 = por %p776_p13, %p775_p9 }
 0x121   : > { %p778_p3 = pnand %p777_p1, %p771_p8 }
 0x18b   : > { %v459_v47 = vpop.permute.xlu1 %458 }
 0x18f   : > { %v461_v49 = vpop.permute.xlu1 %460 }
 0x1f1   : > { %v373_v17 = vpop.f32.mrb[0].mxu0 }
 0x1f2   : > { %v653_v19 = vpop.f32.mrb[1].mxu0  ;;  %v380_v21 = vadd.f32 %v373_v17, %v316_v16 }
 0x1f3   : > { %v376_v20 = vpop.f32.mrb[2].mxu0 }
 0x1f4   : > { %v381_v22 = vadd.f32 %v376_v20, %v317_v18  ;;  %v654_v23 = vpop.f32.mrb[3].mxu0 }
 0x1f6   : > { %v384_v24 = vpack.c.bf16 %v381_v22, %v380_v21 }
 0x1f8   : > { %656 = vmatpush3.bf16.msra.mxu1 %v384_v24 }
 0x1fb   : > { %658 = vmatmul.mubr.msk.bf16.vlgmr.msra.gmra.mrb[0].mxu1 %vm397_vm6, %v721_v25 }
 0x2ce   : > { %v435_v27 = vpop.f32.mrb[0].mxu1 }
 0x2cf   : > { %v436_v28 = vadd.f32 %v622_v26, %v435_v27  ;;  %v659_v29 = vpop.f32.mrb[1].mxu1 }
 0x2d0   : > { %v438_v30 = vpop.f32.mrb[2].mxu1 }
 0x2d1   : > { %722 = vtanh.f32 %v436_v28  ;;  %v439_v31 = vadd.f32 %v622_v26, %v438_v30  ;;  %v660_v32 = vpop.f32.mrb[3].mxu1  ;;  %v625_v35 = vmul.f32 -1.442695, %v436_v28 }
 0x2d3   : > { %724 = vtanh.f32 %v439_v31  ;;  %v626_v36 = vmul.f32 -1.442695, %v439_v31 }
 0x2d4   : > { %726 = vpow2.f32 %v625_v35 }
 0x2d5   : > { %728 = vpow2.f32 %v626_v36 }
 0x2db   : > { %v723_v33 = vpop.eup %722 }
 0x2dc   : > { %468 = vrot.lane.b32.xlu0 %v723_v33, %s844_s26 }
 0x2dd   : > { %v725_v34 = vpop.eup %724 }
 0x2de   : > { %v727_v37 = vpop.eup %726 }
 0x2df   : > { %v448_v38 = vadd.f32 1.0, %v727_v37  ;;  %v729_v39 = vpop.eup %728 }
 0x2e0   : > { %470 = vrot.lane.b32.xlu0 %v725_v34, %s844_s26  ;;  %v449_v40 = vadd.f32 1.0, %v729_v39 }
 0x2e1   : > { %730 = vrcp.f32 %v448_v38 }
 0x2e2   : > { %732 = vrcp.f32 %v449_v40 }
 0x2eb   : > { %v731_v41 = vpop.eup %730 }
 0x2ec   : > { %v733_v44 = vpop.eup %732  ;;  %v464_v48 = vmul.f32 %v731_v41, %v459_v47 }
 0x2ed   : > { %v465_v52 = vmul.f32 %v733_v44, %v461_v49 }
 0x34e   : > { %v469_v42 = vpop.permute.xlu0 %468 }
 0x34f   : > { %v474_v43 = vmul.f32 %v731_v41, %v469_v42 }
 0x351   : > { %478 = vrot.lane.b32.xlu0 %v474_v43, %s843_s13 }
 0x352   : > { %v471_v45 = vpop.permute.xlu0 %470 }
 0x353   : > { %v475_v46 = vmul.f32 %v733_v44, %v471_v45 }
 0x355   : > { %480 = vrot.lane.b32.xlu1 %v475_v46, %s843_s13 }
 0x3c3   : > { %v479_v50 = vpop.permute.xlu0 %478 }
 0x3c4   : > { %v484_v51 = vadd.f32 %v479_v50, %v464_v48 }
 0x3c6   : > { %734 = vtanh.f32 %v484_v51 }
 0x3c7   : > { %v481_v53 = vpop.permute.xlu1 %480 }
 0x3c8   : > { %v485_v54 = vadd.f32 %v481_v53, %v465_v52 }
 0x3ca   : > { %736 = vtanh.f32 %v485_v54 }
 0x3d0   : > { %v735_v55 = vpop.eup %734 }
 0x3d1   : > { %490 = vrot.lane.b32.xlu0 %v735_v55, %s844_s26 }
 0x3d4   : > { %v737_v56 = vpop.eup %736 }
 0x3d5   : > { %492 = vrot.lane.b32.xlu1 %v737_v56, %s844_s26 }
 0x443   : > { %v491_v57 = vpop.permute.xlu0 %490 }
 0x444   : > { %v496_v58 = vmul.f32 %v731_v41, %v491_v57 }
 0x446   : > { %510 = vrot.lane.b32.xlu0 %v496_v58, %s843_s13 }
 0x447   : > { %v493_v59 = vpop.permute.xlu1 %492 }
 0x448   : > { %v497_v60 = vmul.f32 %v733_v44, %v493_v59 }
 0x44a   : > { %500 = vrot.lane.b32.xlu0 %v484_v51, %s845_s28  ;;  %512 = vrot.lane.b32.xlu1 %v497_v60, %s843_s13 }
 0x44e   : > { %502 = vrot.lane.b32.xlu1 %v485_v54, %s845_s28 }
 0x4b8   : > { %v511_v61 = vpop.permute.xlu0 %510 }
 0x4b9   : > { %516 = vst.msk [vmem:[#allocation2] sm:$0xff] %vm335_vm5, %v511_v61  ;;  %518 = vst.msk [vmem:[%s993_s14] sm:$0xff] %vm335_vm5, %v511_v61 }
 0x4bc   : > { %v501_v62 = vpop.permute.xlu0 %500  ;;  %v513_v63 = vpop.permute.xlu1 %512 }
 0x4bd   : > { %506 = vst.msk [vmem:[#allocation3] sm:$0xff] %vm335_vm5, %v501_v62  ;;  %517 = vst.msk [vmem:[#allocation2 + $0x8] sm:$0xff] %vm335_vm5, %v513_v63 }
 0x4be   : > { %519 = vst.msk [vmem:[%s993_s14 + $0x8] sm:$0xff] %vm335_vm5, %v513_v63 }
 0x4bf   : > { %781 = shalt.err (!%p778_p3)
}
 0x4c0   : > { %s782_s14 = scalar_lea.hbm %s1031_s8, 256  ;;  %s786_s25 = scalar_lea.hbm %s1086_s5, 1024 }
 0x4c1   : > { %p783_p4 = scmp.ne.s32.totalorder %s1031_s8, %s782_s14  ;;  %p787_p2 = scmp.lt.u32.totalorder %s1031_s8, %s1086_s5 }
 0x4c2   : > { %p788_p7 = scmp.lt.u32.totalorder %s786_s25, %s782_s14  ;;  %p790_p6 = scmp.lt.u32.totalorder %s782_s14, %s1031_s8 }
 0x4c3   : > { %p784_p5 = pnand %p783_p4, %p1093_p11 }
 0x4c4   : > { %p789_p10 = por %p788_p7, %p787_p2 }
 0x4c5   : > { %p785_p0 = pneg %p784_p5 }
 0x4c6   : > { %p791_p12 = por %p790_p6, %p789_p10 }
 0x4c8   : > { %p792_p8 = pnand %p791_p12, %p785_p0 }
 0x4ca   : > { %795 = shalt.err (!%p792_p8)
}
 0x4cb   : > { %s847_s12 = smov 128   ;;  %s848_s16 = smov 8   ;;  %v503_v0 = vpop.permute.xlu1 %502 }
 0x4cc   : > { %663 = dma.vmem_to_hbm [thread:$0]  (%p1093_p11), %s1033_s15, 256, %s1031_s8, %s521_s22, %s847_s12, %s847_s12, %s848_s16   ;;  %507 = vst.msk [vmem:[#allocation3 + $0x8] sm:$0xff] %vm335_vm5, %v503_v0 }
 0x4cd PF: > { %p674_p9 = scmp.ge.s32.totalorder %s834_s21, 2  ;;  %s549_s29 = sand.u32 1, %s822_s18  }
 0x4ce   : > { %p1094_p13 = scmp.ne.s32.totalorder %s1091_s6, 0  ;;  %s550_s7 = scalar_lea.sflag [#allocation7], %s549_s29 }
 0x4d0   : > { %p670_p1 = pnand %p674_p9, %p1094_p13 }
 0x4d2   : > { %817 = dma.done.wait (!%p670_p1), %s550_s7, 256  }
 0x4d3   : > { %819 = vsyncadd (!%p670_p1), %s550_s7, 4294967040  ;;  %p18_p11 = scmp.ge.s32.totalorder %s904_s24, 6   ;;  %s1095_s18 = smov %s826_s19 }
 0x4d4   : > { %s1096_s19 = smov %s830_s20  ;;  %s1097_s20 = smov %s916_s27 }
 0x4d5   : > { %s1098_s21 = smov %s904_s24  ;;  %20 = sbr.rel (!%p18_p11) target bundleno = 5 (0x5), region = 89 }
 0x4dc   :  { %555 = vsyncpa [#allocation6], 1 }
 0x4dd   :  { %557 = vsyncpa [#allocation6 + $0x1], 1 }
 0x4de   :  { %558 = vsyncpa [#allocation7], 1 }
 0x4df   :  { %560 = vsyncpa [#allocation7 + $0x1], 1 }

</bundles_post_ra>
